<compile_context>
chip_gen: v6e
topology: v6e:2x2x1
jax: 0.10.0
libtpu: 0.0.40
codegen_flags: <defaults>
</compile_context>

<pallas_src>
import jax
import jax.numpy as jnp
from jax.experimental import pallas as pl
from jax.experimental.pallas import tpu as pltpu


def _receiver_kernel(msg_ref, w_ref, b_ref, out_ref):
    # Fused receiver: logits = message @ (W_emb @ W_agent) + b
    # bf16 operands on the MXU, f32 accumulation, f32 bias-add epilogue.
    acc = jnp.dot(msg_ref[...], w_ref[...], preferred_element_type=jnp.float32)
    out_ref[...] = (acc + b_ref[...]).astype(out_ref.dtype)


def _round_up(x: int, m: int) -> int:
    return ((x + m - 1) // m) * m


def symbol_receiver_forward(message, w_emb, w_agent, b_agent, *, block_b: int = 128):
    """message: [B, V] soft symbol (GS / Reinforce relaxed branch); returns agent logits [B, O]."""
    B, V = message.shape
    V2, H = w_emb.shape
    H2, O = w_agent.shape
    assert V == V2 and H == H2
    assert b_agent.shape == (O,)

    # --- Algebraic fold of the two static weight matrices (valid: agent is a single Linear). ---
    w_fused = jnp.dot(w_emb, w_agent, preferred_element_type=jnp.float32)  # [V, O]

    # --- Lane-dense output: pad O up to a multiple of 128 lanes with zero columns. ---
    LANE = 128
    o_pad = _round_up(max(O, LANE), LANE)
    w_fused = jnp.pad(w_fused, ((0, 0), (0, o_pad - O)))
    b2d = jnp.pad(b_agent.reshape(1, O), ((0, 0), (0, o_pad - O))).astype(jnp.float32)

    # --- Batch tiling: tile rows (multiple of 8 sublanes), pad batch to a tile multiple. ---
    tb = min(block_b, _round_up(B, 8))
    b_pad = _round_up(B, tb)
    msg = message
    if b_pad != B:
        msg = jnp.pad(msg, ((0, b_pad - B), (0, 0)))

    # --- bf16 MXU inputs (halves weight/activation DMA bytes), f32 accumulation in-kernel. ---
    msg_bf = msg.astype(jnp.bfloat16)
    w_bf = w_fused.astype(jnp.bfloat16)

    grid = (b_pad // tb,)
    out_padded = pl.pallas_call(
        _receiver_kernel,
        out_shape=jax.ShapeDtypeStruct((b_pad, o_pad), jnp.float32),
        grid_spec=pltpu.PrefetchScalarGridSpec(
            num_scalar_prefetch=0,
            grid=grid,
            in_specs=[
                pl.BlockSpec((tb, V), lambda i: (i, 0)),     # streamed message rows
                pl.BlockSpec((V, o_pad), lambda i: (0, 0)),  # fused weight, VMEM-resident
                pl.BlockSpec((1, o_pad), lambda i: (0, 0)),  # bias, VMEM-resident
            ],
            out_specs=pl.BlockSpec((tb, o_pad), lambda i: (i, 0)),
        ),
        compiler_params=pltpu.CompilerParams(
            dimension_semantics=("parallel",),  # batch axis shards across v7x's 2 TensorCores
        ),
    )(msg_bf, w_bf, b2d)

    # Strip batch / lane padding.
    return out_padded[:B, :O]


# TODO(synk): the discrete (LongTensor index) branch of RelaxedEmbedding is an embedding lookup
# (gather); only the relaxed/Gumbel-Softmax matmul branch is implemented here.


if __name__ == "__main__":
    key = jax.random.PRNGKey(0)
    k_msg, k_emb, k_agent, k_bias = jax.random.split(key, 4)

    B = 256        # batch (>=128 so the batch grid + MXU occupancy are exercised)
    V = 16         # vocab_size
    H = 32         # agent_input_size (embedding dim)
    O = 10         # agent output size (n classes / logits)

    # Gumbel-Softmax style soft message: rows are distributions over the vocab.
    msg_logits = jax.random.normal(k_msg, (B, V), dtype=jnp.float32)
    message = jax.nn.softmax(msg_logits, axis=-1)

    # Deterministic parameter init (synthetic weights, no checkpoint).
    w_emb = jax.random.normal(k_emb, (V, H), dtype=jnp.float32) * 0.1
    w_agent = jax.random.normal(k_agent, (H, O), dtype=jnp.float32) * 0.1
    b_agent = jax.random.normal(k_bias, (O,), dtype=jnp.float32) * 0.01

    out = symbol_receiver_forward(message, w_emb, w_agent, b_agent)
    out = jax.block_until_ready(out)

    # Pure-JAX f32 reference of the original two-matmul forward (loose tol: kernel MXU inputs are bf16).
    ref = (message @ w_emb) @ w_agent + b_agent[None, :]
    assert out.shape == (B, O)
    assert jnp.allclose(out, ref, atol=1e-2, rtol=1e-2), float(jnp.max(jnp.abs(out - ref)))

    print("KERNEL_OK")
</pallas_src>

<mosaic_0001>
module attributes {stable_mosaic.version = 11 : i64} {
  func.func @_receiver_kernel(%arg0: i32, %arg1: memref<128x16xbf16, #tpu.memory_space<vmem>>, %arg2: memref<16x128xbf16, #tpu.memory_space<vmem>>, %arg3: memref<1x128xf32, #tpu.memory_space<vmem>>, %arg4: memref<128x128xf32, #tpu.memory_space<vmem>>) attributes {dimension_semantics = [#tpu.dimension_semantics<parallel>], iteration_bounds = array<i64: 2>, scalar_prefetch = 0 : i64, scratch_operands = 0 : i64, tpu.core_type = #tpu.core_type<tc>, window_params = [{transform_indices = @transform_0, window_bounds = array<i64: 128, 16>}, {pipeline_mode = #tpu.pipeline_mode<synchronous>, transform_indices = @transform_1, window_bounds = array<i64: 16, 128>}, {pipeline_mode = #tpu.pipeline_mode<synchronous>, transform_indices = @transform_2, window_bounds = array<i64: 1, 128>}, {transform_indices = @transform_3, window_bounds = array<i64: 128, 128>}]} {
    %c0 = arith.constant 0 : index
    %c0_0 = arith.constant 0 : index
    %0 = vector.load %arg1[%c0, %c0_0] : memref<128x16xbf16, #tpu.memory_space<vmem>>, vector<128x16xbf16>
    %c0_1 = arith.constant 0 : index
    %c0_2 = arith.constant 0 : index
    %1 = vector.load %arg2[%c0_1, %c0_2] : memref<16x128xbf16, #tpu.memory_space<vmem>>, vector<16x128xbf16>
    %cst = arith.constant dense<0.000000e+00> : vector<128x128xf32>
    %2 = tpu.matmul %0, %1, %cst {dimension_numbers = #tpu.dot_dimension_numbers<[1], [0], [0], [1], [0, 0, 1, 1], [], []>} : vector<128x16xbf16>, vector<16x128xbf16>, vector<128x128xf32> -> vector<128x128xf32>
    %c0_3 = arith.constant 0 : index
    %c0_4 = arith.constant 0 : index
    %3 = vector.load %arg3[%c0_3, %c0_4] : memref<1x128xf32, #tpu.memory_space<vmem>>, vector<1x128xf32>
    %4 = vector.broadcast %3 : vector<1x128xf32> to vector<128x128xf32>
    %5 = arith.addf %2, %4 : vector<128x128xf32>
    %c0_5 = arith.constant 0 : index
    %c0_6 = arith.constant 0 : index
    %6 = vector.load %arg4[%c0_5, %c0_6] : memref<128x128xf32, #tpu.memory_space<vmem>>, vector<128x128xf32>
    tpu.vector_store %arg4[%c0_5, %c0_6], %5 {strides = array<i32>} : memref<128x128xf32, #tpu.memory_space<vmem>>, vector<128x128xf32>,
    return
  }
  func.func @transform_0(%arg0: i32) -> (i32, i32) {
    %c0_i32 = arith.constant 0 : i32
    %c0_i32_0 = arith.constant 0 : i32
    return %arg0, %c0_i32 : i32, i32
  }
  func.func @transform_1(%arg0: i32) -> (i32, i32) {
    %c0_i32 = arith.constant 0 : i32
    %c0_i32_0 = arith.constant 0 : i32
    %c0_i32_1 = arith.constant 0 : i32
    return %c0_i32, %c0_i32_0 : i32, i32
  }
  func.func @transform_2(%arg0: i32) -> (i32, i32) {
    %c0_i32 = arith.constant 0 : i32
    %c0_i32_0 = arith.constant 0 : i32
    %c0_i32_1 = arith.constant 0 : i32
    return %c0_i32, %c0_i32_0 : i32, i32
  }
  func.func @transform_3(%arg0: i32) -> (i32, i32) {
    %c0_i32 = arith.constant 0 : i32
    %c0_i32_0 = arith.constant 0 : i32
    return %arg0, %c0_i32 : i32, i32
  }
}

</mosaic_0001>

<bundles_post_ra>
// kernel: tpu_custom_call.1
= control target key start
LH: loop header
LB: loop body
LE: loop exit
PB: predicated region body
PF: predicated region fallthrough
CT: control target
= control target key end

     0   :  { %8 = vsyncpa [#allocation3], 0  ;;  %s791_s0 = inlined_call_operand.vmem [shape: bf16[256,16], index: 0, kind: input, shape index: {}]   ;;  %s792_s1 = inlined_call_operand.vmem [shape: bf16[16,128], index: 1, kind: input, shape index: {}]   ;;  %s793_s2 = inlined_call_operand.vmem [shape: f32[1,128], index: 2, kind: input, shape index: {}]   ;;  %s794_s3 = inlined_call_operand.hbm [shape: f32[256,128], index: 3, kind: output, shape index: {}]  }
   0x1   :  { %10 = vsyncpa [#allocation3 + $0x1], 0  ;;  %s653_s12 = smov 0   ;;  %s655_s13 = smov 0  }
   0x2   :  { %s657_s14 = smov 0   ;;  %s659_s15 = smov 0  }
   0x3 LB: > { %s674_s16 = sadd.s32 4294967295, %s628_s15   ;;  %s458_s17 = sadd.s32 4294967294, %s628_s15   ;;  %s628_s15 = sphi %s659_s15, %s800_s15   ;;  %s624_s14 = sphi %s657_s14, %s799_s14   ;;  %s620_s13 = sphi %s655_s13, %s798_s13   ;;  %s616_s12 = sphi %s653_s12, %s797_s12  }
   0x4   : > { %s678_s18 = sadd.s32 1, %s628_s15   ;;  %s91_s19 = sadd.s32 1, %s624_s14 }
   0x5   : > { %s88_s20 = ssub.s32 %s628_s15, %s678_s18  ;;  %p101_p0 = scmp.ne.s32.totalorder %s624_s14, %s620_s13 }
   0x6   : > { %p89_p1 = scmp.eq.s32.totalorder %s88_s20, 0  ;;  %p102_p2 = scmp.eq.s32.totalorder %s674_s16, 1 }
   0x7   : > { %p107_p3 = scmp.ne.s32.totalorder %s620_s13, %s616_s12  ;;  %p108_p4 = scmp.eq.s32.totalorder %s458_s17, 1 }
   0x8   : > { %s689_s21 = scalar_select %p89_p1, %s624_s14, %s91_s19  }
   0x9   : > { %p691_p5 = por %p102_p2, %p101_p0  ;;  %p695_p6 = por %p108_p4, %p107_p3 }
   0xa   : > { %p461_p7 = scmp.ge.s32.totalorder %s628_s15, 1  ;;  %p141_p8 = scmp.lt.s32.totalorder %s628_s15, 3 }
   0xc   : > { %p142_p9 = pnand %p461_p7, %p141_p8 }
   0xd   : > { %s463_s26 = sshll.u32 (!%p142_p9), %s674_s16, 4  ;;  %s162_s4 = sand.u32 (!%p142_p9), 1, %s620_s13  }
   0xe   : > { %145 = sbr.rel (%p142_p9) target bundleno = 248 (0xf8), region = 32  ;;  %p166_p10 = scmp.lt.s32.totalorder (!%p142_p9), %s463_s26, 31 }
   0xf   : > { %s462_s5 = sshll.u32 (!%p142_p9), %s162_s4, 7  ;;  %s488_s9 = sshll.u32 (!%p142_p9), %s674_s16, 11 }
  0x10   : > { %s722_s8 = scalar_lea.vmem (!%p142_p9), [#allocation2], %s462_s5  ;;  %s742_s19 = scalar_lea.hbm (!%p142_p9), %s794_s3, %s488_s9 }
  0x11   : > { %s396_s10 = sshll.u32 (!%p142_p9), %s722_s8, 4  ;;  %s751_s16 = scalar_lea.sflag (!%p142_p9), [#allocation3], %s162_s4  ;;  %s744_s10 = int_to_ptr.vmem [resolvable:$true] %s396_s10 }
  0x12   : > { %s568_s20 = scalar_lea.vmem (!%p142_p9), %s744_s10, 2048  ;;  %s630_s24 = smov (!%p142_p9), [#allocation2]  }
  0x13   : > { %v559_v0 = vld [vmem:[%s792_s1] sm:$0xff]   ;;  %s802_s26 = smov (!%p166_p10, %s463_s26), 31  ;;  %vm244_vm0 = vcmask 130048   ;;  %p569_p11 = scmp.ne.s32.totalorder %s744_s10, %s568_s20 }
  0x14   : > { %498 = vmatprep.subr.bf16.mxu0 %v559_v0  ;;  %516 = vmatprep.subr.bf16.mxu1 %v559_v0  ;;  %s464_s27 = sshll.u32 %s802_s26, 2  ;;  %v465_v9 = vld [vmem:[%s793_s2] ss:$0 sm:$0xff]  ;;  %s572_s25 = sshll.u32 %s630_s24, 4  ;;  %s573_s25 = int_to_ptr.vmem [resolvable:$false] %s572_s25 }
  0x15   : > { %499 = vmatpush3.bf16.msra.mxu0 %v559_v0  ;;  %517 = vmatpush3.bf16.msra.mxu1 %v559_v0  ;;  %s169_s30 = scalar_lea.vmem %s791_s0, %s464_s27  ;;  %p570_p12 = pnand %p569_p11, %p691_p5 }
  0x16   : > { %v560_v1 = vld [vmem:[%s169_s30] sm:$0xff]   ;;  %v562_v3 = vld [vmem:[%s169_s30 + $0x8] sm:$0xff]   ;;  %v564_v5 = vld [vmem:[%s169_s30 + $0x10] sm:$0xff]   ;;  %s574_s26 = scalar_lea.vmem %s573_s25, 4096  ;;  %p575_p0 = scmp.lt.s32.totalorder %s744_s10, %s573_s25 }
  0x17   : > { %v561_v2 = vld [vmem:[%s169_s30 + $0x20] sm:$0xff]   ;;  %500 = vmatprep.mubr.msk.bf16.mxu0 %vm244_vm0, %v560_v1  ;;  %v563_v4 = vld [vmem:[%s169_s30 + $0x28] sm:$0xff]   ;;  %v565_v6 = vld [vmem:[%s169_s30 + $0x30] sm:$0xff]   ;;  %p571_p13 = pneg %p570_p12  ;;  %p576_p1 = scmp.lt.s32.totalorder %s574_s26, %s568_s20 }
  0x18   : > { %508 = vmatprep.mubr.msk.bf16.mxu1 %vm244_vm0, %v561_v2  ;;  %501 = vmatmul.mubr.msk.bf16.vlgmr.msra.gmra.mxu0 %vm244_vm0, %v562_v3  ;;  %v566_v7 = vld [vmem:[%s169_s30 + $0x18] sm:$0xff]  }
  0x19   : > { %509 = vmatmul.mubr.msk.bf16.vlgmr.msra.gmra.mxu1 %vm244_vm0, %v563_v4  ;;  %504 = vmatprep.mubr.msk.bf16.mxu0 %vm244_vm0, %v564_v5  ;;  %v567_v8 = vld [vmem:[%s169_s30 + $0x38] sm:$0xff]   ;;  %p577_p2 = por %p576_p1, %p575_p0 }
  0x1a   : > { %512 = vmatprep.mubr.msk.bf16.mxu1 %vm244_vm0, %v565_v6 }
  0x1b   : > { %p578_p3 = pnand %p577_p2, %p571_p13 }
  0x20   : > { %505 = vmatmul.mubr.msk.bf16.gmra.mxu0 %vm244_vm0, %v566_v7 }
  0x21   : > { %513 = vmatmul.mubr.msk.bf16.gmra.mxu1 %vm244_vm0, %v567_v8 }
  0xd8   : > { %v502_v10 = vpop.f32.mrf.mxu0 }
  0xd9   : > { %v312_v11 = vadd.f32 %v502_v10, %v465_v9  ;;  %v510_v12 = vpop.f32.mrf.mxu1 }
  0xda   : > { %v344_v13 = vadd.f32 %v510_v12, %v465_v9  ;;  %v303_v14 = vpop.f32.mrf.mxu0 }
  0xdb   : > { %368 = vst [vmem:[%s722_s8 + $0x10] sm:$0xff] %v312_v11  ;;  %v304_v15 = vadd.f32 %v465_v9, %v303_v14  ;;  %v335_v16 = vpop.f32.mrf.mxu1 }
  0xdc   : > { %376 = vst [vmem:[%s722_s8 + $0x50] sm:$0xff] %v344_v13  ;;  %v336_v17 = vadd.f32 %v465_v9, %v335_v16  ;;  %v503_v18 = vpop.f32.mrf.mxu0 }
  0xdd   : > { %366 = vst [vmem:[%s722_s8] sm:$0xff] %v304_v15  ;;  %v315_v19 = vadd.f32 %v503_v18, %v465_v9  ;;  %v511_v20 = vpop.f32.mrf.mxu1 }
  0xde   : > { %374 = vst [vmem:[%s722_s8 + $0x40] sm:$0xff] %v336_v17  ;;  %v347_v21 = vadd.f32 %v511_v20, %v465_v9  ;;  %v306_v22 = vpop.f32.mrf.mxu0 }
  0xdf   : > { %369 = vst [vmem:[%s722_s8 + $0x18] sm:$0xff] %v315_v19  ;;  %v307_v23 = vadd.f32 %v465_v9, %v306_v22  ;;  %v338_v24 = vpop.f32.mrf.mxu1 }
  0xe0   : > { %377 = vst [vmem:[%s722_s8 + $0x58] sm:$0xff] %v347_v21  ;;  %v339_v25 = vadd.f32 %v465_v9, %v338_v24  ;;  %v506_v26 = vpop.f32.mrf.mxu0 }
  0xe1   : > { %367 = vst [vmem:[%s722_s8 + $0x8] sm:$0xff] %v307_v23  ;;  %v328_v27 = vadd.f32 %v506_v26, %v465_v9  ;;  %v514_v28 = vpop.f32.mrf.mxu1 }
  0xe2   : > { %375 = vst [vmem:[%s722_s8 + $0x48] sm:$0xff] %v339_v25  ;;  %v360_v29 = vadd.f32 %v514_v28, %v465_v9  ;;  %v319_v30 = vpop.f32.mrf.mxu0 }
  0xe3   : > { %372 = vst [vmem:[%s722_s8 + $0x30] sm:$0xff] %v328_v27  ;;  %v320_v31 = vadd.f32 %v465_v9, %v319_v30  ;;  %v351_v32 = vpop.f32.mrf.mxu1 }
  0xe4   : > { %380 = vst [vmem:[%s722_s8 + $0x70] sm:$0xff] %v360_v29  ;;  %v352_v33 = vadd.f32 %v465_v9, %v351_v32  ;;  %v507_v34 = vpop.f32.mrf.mxu0 }
  0xe5   : > { %370 = vst [vmem:[%s722_s8 + $0x20] sm:$0xff] %v320_v31  ;;  %v331_v35 = vadd.f32 %v507_v34, %v465_v9  ;;  %v515_v36 = vpop.f32.mrf.mxu1 }
  0xe6   : > { %378 = vst [vmem:[%s722_s8 + $0x60] sm:$0xff] %v352_v33  ;;  %v363_v37 = vadd.f32 %v515_v36, %v465_v9  ;;  %v322_v38 = vpop.f32.mrf.mxu0 }
  0xe7   : > { %373 = vst [vmem:[%s722_s8 + $0x38] sm:$0xff] %v331_v35  ;;  %v323_v39 = vadd.f32 %v465_v9, %v322_v38  ;;  %v354_v40 = vpop.f32.mrf.mxu1 }
  0xe8   : > { %381 = vst [vmem:[%s722_s8 + $0x78] sm:$0xff] %v363_v37  ;;  %v355_v41 = vadd.f32 %v465_v9, %v354_v40 }
  0xe9   : > { %371 = vst [vmem:[%s722_s8 + $0x28] sm:$0xff] %v323_v39 }
  0xea   : > { %379 = vst [vmem:[%s722_s8 + $0x68] sm:$0xff] %v355_v41 }
  0xeb   : > { %581 = shalt.err (!%p578_p3)
}
  0xec   : > { %s582_s27 = scalar_lea.hbm %s742_s19, 2048  ;;  %s586_s30 = scalar_lea.hbm %s794_s3, 4096 }
  0xed   : > { %p583_p4 = scmp.ne.s32.totalorder %s742_s19, %s582_s27  ;;  %p587_p9 = scmp.lt.s32.totalorder %s742_s19, %s794_s3 }
  0xee   : > { %p588_p10 = scmp.lt.s32.totalorder %s586_s30, %s582_s27 }
  0xef   : > { %p584_p7 = pnand %p583_p4, %p691_p5 }
  0xf0   : > { %p589_p11 = por %p588_p10, %p587_p9 }
  0xf1   : > { %p585_p8 = pneg %p584_p7 }
  0xf3   : > { %p590_p12 = pnand %p589_p11, %p585_p8 }
  0xf5   : > { %593 = shalt.err (!%p590_p12)
}
  0xf6   : > { %s631_s6 = smov 128   ;;  %s632_s7 = smov 8  }
  0xf7   : > { %518 = dma.vmem_to_hbm [thread:$0]  (%p691_p5), %s744_s10, 2048, %s742_s19, %s751_s16, %s631_s6, %s631_s6, %s632_s7  }
  0xf8 PF: > { %p524_p13 = scmp.ge.s32.totalorder %s628_s15, 2  ;;  %s411_s8 = sand.u32 1, %s616_s12  }
  0xf9   : > { %s412_s9 = scalar_lea.sflag [#allocation3], %s411_s8 }
  0xfa   : > { %p521_p0 = pnand %p524_p13, %p695_p6 }
  0xfc   : > { %p522_p1 = pneg %p521_p0 }
  0xfe   : > { %611 = dma.done.wait (%p522_p1), %s412_s9, 2048  }
  0xff   : > { %613 = vsyncadd (%p522_p1), %s412_s9, 4294965248  ;;  %p13_p2 = scmp.ge.s32.totalorder %s678_s18, 4   ;;  %s797_s12 = smov %s620_s13 }
 0x100   : > { %s798_s13 = smov %s624_s14  ;;  %s799_s14 = smov %s689_s21 }
 0x101   : > { %s800_s15 = smov %s678_s18  ;;  %15 = sbr.rel (!%p13_p2) target bundleno = 3 (0x3), region = 67 }
 0x106   :  { %417 = vsyncpa [#allocation3], 1 }
 0x107   :  { %419 = vsyncpa [#allocation3 + $0x1], 1 }

</bundles_post_ra>
